<compile_context>
chip_gen: v7x
topology: tpu7x:2x2x1
jax: 0.10.0
libtpu: 0.0.40
codegen_flags: <defaults>
</compile_context>

<pallas_src>
import functools
import math

import jax
import jax.numpy as jnp
from jax.experimental import pallas as pl
from jax.experimental.pallas import tpu as pltpu


def _round_up(x, m):
    return -(-x // m) * m


def _cconv_kernel(xr_ref, xi_ref, w_ref, o_ref, a_ref, *,
                  K, S, Cin, CH, L, n_chunks):
    # xr_ref / xi_ref : (1, 1, Cin, NW)   zero-padded plane window, flattened
    #                   with row stride S (NW = (rows_out + K) * S).
    # w_ref           : (2*Cout, 2*Cin*K*K) folded depthwise+pointwise weights.
    # o_ref           : (1, 1, 2*Cout, L)   L = rows_out*S lane-dense output
    #                   (cols >= Wo and rows >= Ho are junk, sliced off later).
    # a_ref           : (2*Cin*K*K, CH)     stacked shifted-input operand.
    KK = K * K
    for ci in range(n_chunks):
        start = min(ci * CH, L - CH)        # clamp last chunk (overlap recompute OK)
        # Build the stacked operand: row block (plane p, tap t) holds the Cin
        # input rows shifted by (dy*S + dx) lanes.  Pure copy / lane-shift work;
        # every multiply-accumulate happens on the MXU below.
        for p, ref in enumerate((xr_ref, xi_ref)):
            for t in range(KK):
                dy, dx = divmod(t, K)
                off = start + dy * S + dx   # static offset
                r0 = (p * KK + t) * Cin
                a_ref[r0:r0 + Cin, :] = ref[0, 0, :, off:off + CH]
        # One MXU matmul per chunk, stored lane-dense straight into the output.
        o_ref[0, 0, :, start:start + CH] = jnp.dot(
            w_ref[...], a_ref[...], preferred_element_type=jnp.float32)


def cconv2d_pallas(x, dw_r, dw_i, pw_r, pw_i, padding, *,
                   compute_dtype=jnp.float32):
    """x: (B, Cin, H, W, 2) float32.
       dw_*: (Cin, K, K) depthwise weights; pw_*: (Cout, Cin) pointwise weights.
       Returns (B, Cout, H', W', 2).  Stride is 1 (module never forwards stride);
       symmetric padding only.  compute_dtype=jnp.bfloat16 is recommended on
       v6e/v7x (matmul operands only; accumulation stays f32)."""
    x = x.astype(jnp.float32)
    B, Cin, H, W, _ = x.shape
    K = dw_r.shape[-1]
    KK = K * K
    Cout = pw_r.shape[0]
    P = padding
    Hp, Wp = H + 2 * P, W + 2 * P
    Ho, Wo = Hp - K + 1, Wp - K + 1
    in_isz = jnp.dtype(compute_dtype).itemsize

    # ---- choose lane row-stride S and the base row-tile height -------------
    # S >= Wp; rows_out*S must be a multiple of 128 (lane-dense stores).  Small
    # static search over alignment granularities balancing junk columns vs junk
    # rows (review: cap waste instead of the old absolute fallback).
    best = None
    for g in (1, 2, 4, 8, 16, 32, 64, 128):
        S_g = _round_up(Wp, g)
        base_g = 128 // math.gcd(S_g, 128)
        rows_pad = _round_up(Ho, base_g)
        waste = (S_g * rows_pad) / float(Wo * Ho)
        if best is None or waste < best[0] - 1e-9:
            best = (waste, S_g, base_g)
    _, S, base = best

    # ---- grow the row tile toward a target lane count, bounded by VMEM -----
    TARGET_LANES = 2048
    VMEM_BUDGET = 12 * 1024 * 1024
    rows_cap = _round_up(Ho, base)
    m_max = rows_cap // base
    m = max(1, min(m_max, TARGET_LANES // (base * S)))

    def footprint(mm):
        rows_o = base * mm
        rows_w = rows_o + K                      # K-1 halo rows + 1 safety row
        lt = rows_o * S
        ch_cap = max(128, ((2 * 1024 * 1024) // (2 * Cin * KK * in_isz)) // 128 * 128)
        ch = min(lt, ch_cap)
        inp = 2 * 2 * Cin * rows_w * S * in_isz  # 2 planes, double-buffered
        out = 2 * (2 * Cout) * lt * 4            # double-buffered f32 output
        scr = 2 * Cin * KK * ch * in_isz         # stacked-operand scratch
        wgt = 2 * (2 * Cout) * (2 * Cin * KK) * in_isz
        return inp + out + scr + wgt, ch, lt, rows_o, rows_w

    while m > 1 and footprint(m)[0] > VMEM_BUDGET:
        m -= 1
    step_bytes, CH, L_t, rows_out, rows_win = footprint(m)

    n_tiles = -(-Ho // rows_out)
    Ho_pad = n_tiles * rows_out
    Hp_stage = Ho_pad + K
    NW = rows_win * S
    n_chunks = -(-L_t // CH)

    # ---- stage planes: pad, then gather (rows_out+K)-row windows ------------
    def stage(plane):                     # (B, Cin, H, W) -> (B, n_tiles, Cin, NW)
        buf = jnp.zeros((B, Cin, Hp_stage, S), compute_dtype)
        buf = buf.at[:, :, P:P + H, P:P + W].set(plane.astype(compute_dtype))
        row_idx = (jnp.arange(n_tiles)[:, None] * rows_out
                   + jnp.arange(rows_win)[None, :])          # (n_tiles, rows_win)
        tiles = buf[:, :, row_idx, :]                         # (B,Cin,nt,rows_win,S)
        tiles = jnp.transpose(tiles, (0, 2, 1, 3, 4))         # (B,nt,Cin,rows_win,S)
        return tiles.reshape(B, n_tiles, Cin, NW)

    xr = stage(x[..., 0])
    xi = stage(x[..., 1])

    # ---- fold depthwise into pointwise: dense (2*Cout, 2*Cin*KK) weight -----
    dwr = dw_r.astype(jnp.float32).reshape(Cin, KK)
    dwi = dw_i.astype(jnp.float32).reshape(Cin, KK)
    pwr = pw_r.astype(jnp.float32)
    pwi = pw_i.astype(jnp.float32)
    wr = jnp.einsum('oc,ct->otc', pwr, dwr).reshape(Cout, KK * Cin)
    wi = jnp.einsum('oc,ct->otc', pwi, dwi).reshape(Cout, KK * Cin)
    #   c_real = Wr * xr_taps - Wi * xi_taps ;  c_im = Wi * xr_taps + Wr * xi_taps
    w_big = jnp.concatenate(
        [jnp.concatenate([wr, -wi], axis=1),
         jnp.concatenate([wi,  wr], axis=1)], axis=0).astype(compute_dtype)

    kernel = functools.partial(_cconv_kernel, K=K, S=S, Cin=Cin,
                               CH=CH, L=L_t, n_chunks=n_chunks)

    # Generation-aware VMEM limit from the actual per-step footprint.
    try:
        vmem_cap = int(pltpu.get_tpu_info().vmem_capacity_bytes)
    except Exception:
        vmem_cap = 64 * 1024 * 1024           # conservative (v7x) fallback
    vmem_limit = int(min(max(step_bytes + 8 * 1024 * 1024, 32 * 1024 * 1024),
                         int(0.8 * vmem_cap)))

    flops = int(2 * B * n_tiles * (2 * Cout) * (2 * Cin * KK) * L_t)
    bytes_accessed = int(2 * B * n_tiles * Cin * NW * in_isz
                         + B * n_tiles * 2 * Cout * L_t * 4
                         + w_big.size * in_isz)

    out = pl.pallas_call(
        kernel,
        out_shape=jax.ShapeDtypeStruct((B, n_tiles, 2 * Cout, L_t), jnp.float32),
        grid_spec=pltpu.PrefetchScalarGridSpec(
            num_scalar_prefetch=0,
            grid=(B, n_tiles),
            in_specs=[
                pl.BlockSpec((1, 1, Cin, NW), lambda b, t: (b, t, 0, 0)),
                pl.BlockSpec((1, 1, Cin, NW), lambda b, t: (b, t, 0, 0)),
                pl.BlockSpec((2 * Cout, 2 * Cin * KK), lambda b, t: (0, 0)),
            ],
            out_specs=pl.BlockSpec((1, 1, 2 * Cout, L_t), lambda b, t: (b, t, 0, 0)),
            scratch_shapes=[pltpu.VMEM((2 * Cin * KK, CH), compute_dtype)],
        ),
        compiler_params=pltpu.CompilerParams(
            dimension_semantics=("parallel", "parallel"),
            vmem_limit_bytes=vmem_limit),
        cost_estimate=pl.CostEstimate(flops=flops, transcendentals=0,
                                      bytes_accessed=bytes_accessed),
    )(xr, xi, w_big)

    # (B, n_tiles, 2*Cout, rows_out*S) -> (B, Cout, Ho, Wo, 2):
    # split real/imag, unflatten rows, drop junk rows/cols, complex axis last.
    out = out.reshape(B, n_tiles, 2, Cout, rows_out, S)
    out = jnp.transpose(out, (0, 3, 1, 4, 5, 2))       # (B,Cout,nt,rows_out,S,2)
    out = out.reshape(B, Cout, Ho_pad, S, 2)
    return out[:, :, :Ho, :Wo, :]


# ----------------------- pure-JAX reference (for checking) -----------------------
def _ref_dsconv(x_nchw, dw_oihw, pw_oihw, pad):
    cin = x_nchw.shape[1]
    y = jax.lax.conv_general_dilated(
        x_nchw, dw_oihw, window_strides=(1, 1),
        padding=[(pad, pad), (pad, pad)],
        dimension_numbers=("NCHW", "OIHW", "NCHW"),
        feature_group_count=cin)
    z = jax.lax.conv_general_dilated(
        y, pw_oihw, window_strides=(1, 1), padding="VALID",
        dimension_numbers=("NCHW", "OIHW", "NCHW"))
    return z


def _ref_cconv2d(x, dw_r_oihw, dw_i_oihw, pw_r_oihw, pw_i_oihw, pad):
    xr, xi = x[..., 0], x[..., 1]
    real = lambda a: _ref_dsconv(a, dw_r_oihw, pw_r_oihw, pad)
    imag = lambda a: _ref_dsconv(a, dw_i_oihw, pw_i_oihw, pad)
    c_real = real(xr) - imag(xi)
    c_im = imag(xr) + real(xi)
    return jnp.stack([c_real, c_im], axis=-1)


if __name__ == "__main__":
    B, Cin, Cout, H, W = 2, 4, 8, 16, 16
    K, PAD = 3, 1

    key = jax.random.PRNGKey(0)
    k_x, k_dwr, k_dwi, k_pwr, k_pwi = jax.random.split(key, 5)

    # Input: (B, Cin, H, W, 2) — NCHW with trailing complex dim, as in the module.
    x = jax.random.normal(k_x, (B, Cin, H, W, 2), dtype=jnp.float32)

    # PyTorch Conv2d weight shapes.
    dw_r_oihw = jax.random.normal(k_dwr, (Cin, 1, K, K), dtype=jnp.float32) * 0.2
    dw_i_oihw = jax.random.normal(k_dwi, (Cin, 1, K, K), dtype=jnp.float32) * 0.2
    pw_r_oihw = jax.random.normal(k_pwr, (Cout, Cin, 1, 1), dtype=jnp.float32) * 0.2
    pw_i_oihw = jax.random.normal(k_pwi, (Cout, Cin, 1, 1), dtype=jnp.float32) * 0.2

    # Kernel-friendly weight layouts: depthwise (Cin, K, K), pointwise (Cout, Cin).
    dw_r = dw_r_oihw[:, 0]
    dw_i = dw_i_oihw[:, 0]
    pw_r = pw_r_oihw[:, :, 0, 0]
    pw_i = pw_i_oihw[:, :, 0, 0]

    out = cconv2d_pallas(x, dw_r, dw_i, pw_r, pw_i, PAD)
    out = jax.block_until_ready(out)

    ref = _ref_cconv2d(x, dw_r_oihw, dw_i_oihw, pw_r_oihw, pw_i_oihw, PAD)
    assert out.shape == (B, Cout, H, W, 2), out.shape
    assert jnp.allclose(out, ref, atol=2e-4, rtol=2e-4), \
        float(jnp.max(jnp.abs(out - ref)))

    print("KERNEL_OK")
</pallas_src>

<mosaic_0001>
module attributes {stable_mosaic.version = 11 : i64} {
  func.func @_cconv_kernel(%arg0: i32, %arg1: i32, %arg2: memref<1x1x4x456xf32, #tpu.memory_space<vmem>>, %arg3: memref<1x1x4x456xf32, #tpu.memory_space<vmem>>, %arg4: memref<16x72xf32, #tpu.memory_space<vmem>>, %arg5: memref<1x1x16x384xf32, #tpu.memory_space<vmem>>, %arg6: memref<72x384xf32, #tpu.memory_space<vmem>>) attributes {dimension_semantics = [#tpu.dimension_semantics<parallel>, #tpu.dimension_semantics<parallel>], iteration_bounds = array<i64: 2, 1>, scalar_prefetch = 0 : i64, scratch_operands = 1 : i64, tpu.core_type = #tpu.core_type<tc>, window_params = [{transform_indices = @transform_0, window_bounds = array<i64: 1, 1, 4, 456>}, {transform_indices = @transform_1, window_bounds = array<i64: 1, 1, 4, 456>}, {pipeline_mode = #tpu.pipeline_mode<synchronous>, transform_indices = @transform_2, window_bounds = array<i64: 16, 72>}, {transform_indices = @transform_3, window_bounds = array<i64: 1, 1, 16, 384>}]} {
    %c0 = arith.constant 0 : index
    %c0_0 = arith.constant 0 : index
    %c0_1 = arith.constant 0 : index
    %c0_2 = arith.constant 0 : index
    %0 = vector.load %arg2[%c0, %c0_0, %c0_1, %c0_2] : memref<1x1x4x456xf32, #tpu.memory_space<vmem>>, vector<1x1x4x384xf32>
    %1 = vector.shape_cast %0 : vector<1x1x4x384xf32> to vector<4x384xf32>
    %c0_3 = arith.constant 0 : index
    %c0_4 = arith.constant 0 : index
    %2 = vector.load %arg6[%c0_3, %c0_4] : memref<72x384xf32, #tpu.memory_space<vmem>>, vector<4x384xf32>
    tpu.vector_store %arg6[%c0_3, %c0_4], %1 {strides = array<i32>} : memref<72x384xf32, #tpu.memory_space<vmem>>, vector<4x384xf32>,
    %c0_5 = arith.constant 0 : index
    %c0_6 = arith.constant 0 : index
    %c0_7 = arith.constant 0 : index
    %c1 = arith.constant 1 : index
    %3 = vector.load %arg2[%c0_5, %c0_6, %c0_7, %c1] : memref<1x1x4x456xf32, #tpu.memory_space<vmem>>, vector<1x1x4x384xf32>
    %4 = vector.shape_cast %3 : vector<1x1x4x384xf32> to vector<4x384xf32>
    %c4 = arith.constant 4 : index
    %c0_8 = arith.constant 0 : index
    %5 = vector.load %arg6[%c4, %c0_8] : memref<72x384xf32, #tpu.memory_space<vmem>>, vector<4x384xf32>
    tpu.vector_store %arg6[%c4, %c0_8], %4 {strides = array<i32>} : memref<72x384xf32, #tpu.memory_space<vmem>>, vector<4x384xf32>,
    %c0_9 = arith.constant 0 : index
    %c0_10 = arith.constant 0 : index
    %c0_11 = arith.constant 0 : index
    %c2 = arith.constant 2 : index
    %6 = vector.load %arg2[%c0_9, %c0_10, %c0_11, %c2] : memref<1x1x4x456xf32, #tpu.memory_space<vmem>>, vector<1x1x4x384xf32>
    %7 = vector.shape_cast %6 : vector<1x1x4x384xf32> to vector<4x384xf32>
    %c8 = arith.constant 8 : index
    %c0_12 = arith.constant 0 : index
    %8 = vector.load %arg6[%c8, %c0_12] : memref<72x384xf32, #tpu.memory_space<vmem>>, vector<4x384xf32>
    tpu.vector_store %arg6[%c8, %c0_12], %7 {strides = array<i32>} : memref<72x384xf32, #tpu.memory_space<vmem>>, vector<4x384xf32>,
    %c0_13 = arith.constant 0 : index
    %c0_14 = arith.constant 0 : index
    %c0_15 = arith.constant 0 : index
    %c24 = arith.constant 24 : index
    %9 = vector.load %arg2[%c0_13, %c0_14, %c0_15, %c24] : memref<1x1x4x456xf32, #tpu.memory_space<vmem>>, vector<1x1x4x384xf32>
    %10 = vector.shape_cast %9 : vector<1x1x4x384xf32> to vector<4x384xf32>
    %c12 = arith.constant 12 : index
    %c0_16 = arith.constant 0 : index
    %11 = vector.load %arg6[%c12, %c0_16] : memref<72x384xf32, #tpu.memory_space<vmem>>, vector<4x384xf32>
    tpu.vector_store %arg6[%c12, %c0_16], %10 {strides = array<i32>} : memref<72x384xf32, #tpu.memory_space<vmem>>, vector<4x384xf32>,
    %c0_17 = arith.constant 0 : index
    %c0_18 = arith.constant 0 : index
    %c0_19 = arith.constant 0 : index
    %c25 = arith.constant 25 : index
    %12 = vector.load %arg2[%c0_17, %c0_18, %c0_19, %c25] : memref<1x1x4x456xf32, #tpu.memory_space<vmem>>, vector<1x1x4x384xf32>
    %13 = vector.shape_cast %12 : vector<1x1x4x384xf32> to vector<4x384xf32>
    %c16 = arith.constant 16 : index
    %c0_20 = arith.constant 0 : index
    %14 = vector.load %arg6[%c16, %c0_20] : memref<72x384xf32, #tpu.memory_space<vmem>>, vector<4x384xf32>
    tpu.vector_store %arg6[%c16, %c0_20], %13 {strides = array<i32>} : memref<72x384xf32, #tpu.memory_space<vmem>>, vector<4x384xf32>,
    %c0_21 = arith.constant 0 : index
    %c0_22 = arith.constant 0 : index
    %c0_23 = arith.constant 0 : index
    %c26 = arith.constant 26 : index
    %15 = vector.load %arg2[%c0_21, %c0_22, %c0_23, %c26] : memref<1x1x4x456xf32, #tpu.memory_space<vmem>>, vector<1x1x4x384xf32>
    %16 = vector.shape_cast %15 : vector<1x1x4x384xf32> to vector<4x384xf32>
    %c20 = arith.constant 20 : index
    %c0_24 = arith.constant 0 : index
    %17 = vector.load %arg6[%c20, %c0_24] : memref<72x384xf32, #tpu.memory_space<vmem>>, vector<4x384xf32>
    tpu.vector_store %arg6[%c20, %c0_24], %16 {strides = array<i32>} : memref<72x384xf32, #tpu.memory_space<vmem>>, vector<4x384xf32>,
    %c0_25 = arith.constant 0 : index
    %c0_26 = arith.constant 0 : index
    %c0_27 = arith.constant 0 : index
    %c48 = arith.constant 48 : index
    %18 = vector.load %arg2[%c0_25, %c0_26, %c0_27, %c48] : memref<1x1x4x456xf32, #tpu.memory_space<vmem>>, vector<1x1x4x384xf32>
    %19 = vector.shape_cast %18 : vector<1x1x4x384xf32> to vector<4x384xf32>
    %c24_28 = arith.constant 24 : index
    %c0_29 = arith.constant 0 : index
    %20 = vector.load %arg6[%c24_28, %c0_29] : memref<72x384xf32, #tpu.memory_space<vmem>>, vector<4x384xf32>
    tpu.vector_store %arg6[%c24_28, %c0_29], %19 {strides = array<i32>} : memref<72x384xf32, #tpu.memory_space<vmem>>, vector<4x384xf32>,
    %c0_30 = arith.constant 0 : index
    %c0_31 = arith.constant 0 : index
    %c0_32 = arith.constant 0 : index
    %c49 = arith.constant 49 : index
    %21 = vector.load %arg2[%c0_30, %c0_31, %c0_32, %c49] : memref<1x1x4x456xf32, #tpu.memory_space<vmem>>, vector<1x1x4x384xf32>
    %22 = vector.shape_cast %21 : vector<1x1x4x384xf32> to vector<4x384xf32>
    %c28 = arith.constant 28 : index
    %c0_33 = arith.constant 0 : index
    %23 = vector.load %arg6[%c28, %c0_33] : memref<72x384xf32, #tpu.memory_space<vmem>>, vector<4x384xf32>
    tpu.vector_store %arg6[%c28, %c0_33], %22 {strides = array<i32>} : memref<72x384xf32, #tpu.memory_space<vmem>>, vector<4x384xf32>,
    %c0_34 = arith.constant 0 : index
    %c0_35 = arith.constant 0 : index
    %c0_36 = arith.constant 0 : index
    %c50 = arith.constant 50 : index
    %24 = vector.load %arg2[%c0_34, %c0_35, %c0_36, %c50] : memref<1x1x4x456xf32, #tpu.memory_space<vmem>>, vector<1x1x4x384xf32>
    %25 = vector.shape_cast %24 : vector<1x1x4x384xf32> to vector<4x384xf32>
    %c32 = arith.constant 32 : index
    %c0_37 = arith.constant 0 : index
    %26 = vector.load %arg6[%c32, %c0_37] : memref<72x384xf32, #tpu.memory_space<vmem>>, vector<4x384xf32>
    tpu.vector_store %arg6[%c32, %c0_37], %25 {strides = array<i32>} : memref<72x384xf32, #tpu.memory_space<vmem>>, vector<4x384xf32>,
    %c0_38 = arith.constant 0 : index
    %c0_39 = arith.constant 0 : index
    %c0_40 = arith.constant 0 : index
    %c0_41 = arith.constant 0 : index
    %27 = vector.load %arg3[%c0_38, %c0_39, %c0_40, %c0_41] : memref<1x1x4x456xf32, #tpu.memory_space<vmem>>, vector<1x1x4x384xf32>
    %28 = vector.shape_cast %27 : vector<1x1x4x384xf32> to vector<4x384xf32>
    %c36 = arith.constant 36 : index
    %c0_42 = arith.constant 0 : index
    %29 = vector.load %arg6[%c36, %c0_42] : memref<72x384xf32, #tpu.memory_space<vmem>>, vector<4x384xf32>
    tpu.vector_store %arg6[%c36, %c0_42], %28 {strides = array<i32>} : memref<72x384xf32, #tpu.memory_space<vmem>>, vector<4x384xf32>,
    %c0_43 = arith.constant 0 : index
    %c0_44 = arith.constant 0 : index
    %c0_45 = arith.constant 0 : index
    %c1_46 = arith.constant 1 : index
    %30 = vector.load %arg3[%c0_43, %c0_44, %c0_45, %c1_46] : memref<1x1x4x456xf32, #tpu.memory_space<vmem>>, vector<1x1x4x384xf32>
    %31 = vector.shape_cast %30 : vector<1x1x4x384xf32> to vector<4x384xf32>
    %c40 = arith.constant 40 : index
    %c0_47 = arith.constant 0 : index
    %32 = vector.load %arg6[%c40, %c0_47] : memref<72x384xf32, #tpu.memory_space<vmem>>, vector<4x384xf32>
    tpu.vector_store %arg6[%c40, %c0_47], %31 {strides = array<i32>} : memref<72x384xf32, #tpu.memory_space<vmem>>, vector<4x384xf32>,
    %c0_48 = arith.constant 0 : index
    %c0_49 = arith.constant 0 : index
    %c0_50 = arith.constant 0 : index
    %c2_51 = arith.constant 2 : index
    %33 = vector.load %arg3[%c0_48, %c0_49, %c0_50, %c2_51] : memref<1x1x4x456xf32, #tpu.memory_space<vmem>>, vector<1x1x4x384xf32>
    %34 = vector.shape_cast %33 : vector<1x1x4x384xf32> to vector<4x384xf32>
    %c44 = arith.constant 44 : index
    %c0_52 = arith.constant 0 : index
    %35 = vector.load %arg6[%c44, %c0_52] : memref<72x384xf32, #tpu.memory_space<vmem>>, vector<4x384xf32>
    tpu.vector_store %arg6[%c44, %c0_52], %34 {strides = array<i32>} : memref<72x384xf32, #tpu.memory_space<vmem>>, vector<4x384xf32>,
    %c0_53 = arith.constant 0 : index
    %c0_54 = arith.constant 0 : index
    %c0_55 = arith.constant 0 : index
    %c24_56 = arith.constant 24 : index
    %36 = vector.load %arg3[%c0_53, %c0_54, %c0_55, %c24_56] : memref<1x1x4x456xf32, #tpu.memory_space<vmem>>, vector<1x1x4x384xf32>
    %37 = vector.shape_cast %36 : vector<1x1x4x384xf32> to vector<4x384xf32>
    %c48_57 = arith.constant 48 : index
    %c0_58 = arith.constant 0 : index
    %38 = vector.load %arg6[%c48_57, %c0_58] : memref<72x384xf32, #tpu.memory_space<vmem>>, vector<4x384xf32>
    tpu.vector_store %arg6[%c48_57, %c0_58], %37 {strides = array<i32>} : memref<72x384xf32, #tpu.memory_space<vmem>>, vector<4x384xf32>,
    %c0_59 = arith.constant 0 : index
    %c0_60 = arith.constant 0 : index
    %c0_61 = arith.constant 0 : index
    %c25_62 = arith.constant 25 : index
    %39 = vector.load %arg3[%c0_59, %c0_60, %c0_61, %c25_62] : memref<1x1x4x456xf32, #tpu.memory_space<vmem>>, vector<1x1x4x384xf32>
    %40 = vector.shape_cast %39 : vector<1x1x4x384xf32> to vector<4x384xf32>
    %c52 = arith.constant 52 : index
    %c0_63 = arith.constant 0 : index
    %41 = vector.load %arg6[%c52, %c0_63] : memref<72x384xf32, #tpu.memory_space<vmem>>, vector<4x384xf32>
    tpu.vector_store %arg6[%c52, %c0_63], %40 {strides = array<i32>} : memref<72x384xf32, #tpu.memory_space<vmem>>, vector<4x384xf32>,
    %c0_64 = arith.constant 0 : index
    %c0_65 = arith.constant 0 : index
    %c0_66 = arith.constant 0 : index
    %c26_67 = arith.constant 26 : index
    %42 = vector.load %arg3[%c0_64, %c0_65, %c0_66, %c26_67] : memref<1x1x4x456xf32, #tpu.memory_space<vmem>>, vector<1x1x4x384xf32>
    %43 = vector.shape_cast %42 : vector<1x1x4x384xf32> to vector<4x384xf32>
    %c56 = arith.constant 56 : index
    %c0_68 = arith.constant 0 : index
    %44 = vector.load %arg6[%c56, %c0_68] : memref<72x384xf32, #tpu.memory_space<vmem>>, vector<4x384xf32>
    tpu.vector_store %arg6[%c56, %c0_68], %43 {strides = array<i32>} : memref<72x384xf32, #tpu.memory_space<vmem>>, vector<4x384xf32>,
    %c0_69 = arith.constant 0 : index
    %c0_70 = arith.constant 0 : index
    %c0_71 = arith.constant 0 : index
    %c48_72 = arith.constant 48 : index
    %45 = vector.load %arg3[%c0_69, %c0_70, %c0_71, %c48_72] : memref<1x1x4x456xf32, #tpu.memory_space<vmem>>, vector<1x1x4x384xf32>
    %46 = vector.shape_cast %45 : vector<1x1x4x384xf32> to vector<4x384xf32>
    %c60 = arith.constant 60 : index
    %c0_73 = arith.constant 0 : index
    %47 = vector.load %arg6[%c60, %c0_73] : memref<72x384xf32, #tpu.memory_space<vmem>>, vector<4x384xf32>
    tpu.vector_store %arg6[%c60, %c0_73], %46 {strides = array<i32>} : memref<72x384xf32, #tpu.memory_space<vmem>>, vector<4x384xf32>,
    %c0_74 = arith.constant 0 : index
    %c0_75 = arith.constant 0 : index
    %c0_76 = arith.constant 0 : index
    %c49_77 = arith.constant 49 : index
    %48 = vector.load %arg3[%c0_74, %c0_75, %c0_76, %c49_77] : memref<1x1x4x456xf32, #tpu.memory_space<vmem>>, vector<1x1x4x384xf32>
    %49 = vector.shape_cast %48 : vector<1x1x4x384xf32> to vector<4x384xf32>
    %c64 = arith.constant 64 : index
    %c0_78 = arith.constant 0 : index
    %50 = vector.load %arg6[%c64, %c0_78] : memref<72x384xf32, #tpu.memory_space<vmem>>, vector<4x384xf32>
    tpu.vector_store %arg6[%c64, %c0_78], %49 {strides = array<i32>} : memref<72x384xf32, #tpu.memory_space<vmem>>, vector<4x384xf32>,
    %c0_79 = arith.constant 0 : index
    %c0_80 = arith.constant 0 : index
    %c0_81 = arith.constant 0 : index
    %c50_82 = arith.constant 50 : index
    %51 = vector.load %arg3[%c0_79, %c0_80, %c0_81, %c50_82] : memref<1x1x4x456xf32, #tpu.memory_space<vmem>>, vector<1x1x4x384xf32>
    %52 = vector.shape_cast %51 : vector<1x1x4x384xf32> to vector<4x384xf32>
    %c68 = arith.constant 68 : index
    %c0_83 = arith.constant 0 : index
    %53 = vector.load %arg6[%c68, %c0_83] : memref<72x384xf32, #tpu.memory_space<vmem>>, vector<4x384xf32>
    tpu.vector_store %arg6[%c68, %c0_83], %52 {strides = array<i32>} : memref<72x384xf32, #tpu.memory_space<vmem>>, vector<4x384xf32>,
    %c0_84 = arith.constant 0 : index
    %c0_85 = arith.constant 0 : index
    %54 = vector.load %arg4[%c0_84, %c0_85] : memref<16x72xf32, #tpu.memory_space<vmem>>, vector<16x72xf32>
    %c0_86 = arith.constant 0 : index
    %c0_87 = arith.constant 0 : index
    %55 = vector.load %arg6[%c0_86, %c0_87] : memref<72x384xf32, #tpu.memory_space<vmem>>, vector<72x384xf32>
    %cst = arith.constant dense<0.000000e+00> : vector<16x384xf32>
    %56 = tpu.matmul %54, %55, %cst {dimension_numbers = #tpu.dot_dimension_numbers<[1], [0], [0], [1], [0, 0, 1, 1], [], []>} : vector<16x72xf32>, vector<72x384xf32>, vector<16x384xf32> -> vector<16x384xf32>
    %c0_88 = arith.constant 0 : index
    %c0_89 = arith.constant 0 : index
    %c0_90 = arith.constant 0 : index
    %c0_91 = arith.constant 0 : index
    %57 = vector.load %arg5[%c0_88, %c0_89, %c0_90, %c0_91] : memref<1x1x16x384xf32, #tpu.memory_space<vmem>>, vector<1x1x16x384xf32>
    %58 = vector.shape_cast %57 : vector<1x1x16x384xf32> to vector<16x384xf32>
    %59 = vector.shape_cast %56 : vector<16x384xf32> to vector<1x1x16x384xf32>
    tpu.vector_store %arg5[%c0_88, %c0_89, %c0_90, %c0_91], %59 {strides = array<i32>} : memref<1x1x16x384xf32, #tpu.memory_space<vmem>>, vector<1x1x16x384xf32>,
    return
  }
  func.func @transform_0(%arg0: i32, %arg1: i32) -> (i32, i32, i32, i32) {
    %c0_i32 = arith.constant 0 : i32
    %c0_i32_0 = arith.constant 0 : i32
    %c0_i32_1 = arith.constant 0 : i32
    return %arg0, %arg1, %c0_i32, %c0_i32_0 : i32, i32, i32, i32
  }
  func.func @transform_1(%arg0: i32, %arg1: i32) -> (i32, i32, i32, i32) {
    %c0_i32 = arith.constant 0 : i32
    %c0_i32_0 = arith.constant 0 : i32
    %c0_i32_1 = arith.constant 0 : i32
    return %arg0, %arg1, %c0_i32, %c0_i32_0 : i32, i32, i32, i32
  }
  func.func @transform_2(%arg0: i32, %arg1: i32) -> (i32, i32) {
    %c0_i32 = arith.constant 0 : i32
    %c0_i32_0 = arith.constant 0 : i32
    %c0_i32_1 = arith.constant 0 : i32
    return %c0_i32, %c0_i32_0 : i32, i32
  }
  func.func @transform_3(%arg0: i32, %arg1: i32) -> (i32, i32, i32, i32) {
    %c0_i32 = arith.constant 0 : i32
    %c0_i32_0 = arith.constant 0 : i32
    %c0_i32_1 = arith.constant 0 : i32
    return %arg0, %arg1, %c0_i32, %c0_i32_0 : i32, i32, i32, i32
  }
}

</mosaic_0001>

<bundles_post_ra>
// kernel: tpu_custom_call.1
= control target key start
LH: loop header
LB: loop body
LE: loop exit
PB: predicated region body
PF: predicated region fallthrough
CT: control target
= control target key end

     0   :  { %s1793_s0 = inlined_call_operand.hbm [shape: f32[2,1,4,456], index: 0, kind: input, shape index: {}]   ;;  %s1794_s1 = inlined_call_operand.hbm [shape: f32[2,1,4,456], index: 1, kind: input, shape index: {}]   ;;  %s1795_s2 = inlined_call_operand.hbm [shape: f32[16,72], index: 2, kind: input, shape index: {}]   ;;  %s1796_s3 = inlined_call_operand.hbm [shape: f32[2,1,16,384], index: 3, kind: output, shape index: {}]  }
   0x1   :  { %1802 = sst [smem:[#allocation15_spill]] %s1795_s2 }
   0x2   :  { %8 = vsyncpa [#allocation4], 0 }
   0x3   :  { %10 = vsyncpa [#allocation4 + $0x1], 0 }
   0x4   :  { %11 = vsyncpa [#allocation7], 0 }
   0x5   :  { %13 = vsyncpa [#allocation7 + $0x1], 0 }
   0x6   :  { %14 = vsyncpa [#allocation5], 0 }
   0x7   :  { %16 = vsyncpa [#allocation5 + $0x1], 0  ;;  %s1395_s12 = smov 0   ;;  %s1397_s13 = smov 0  }
   0x8   :  { %s1399_s14 = smov 0   ;;  %s1401_s15 = smov 0  }
   0x9   :  { %s1403_s16 = smov 0   ;;  %s1405_s17 = smov 0  }
   0xa LB: > { %s1426_s18 = sadd.s32 4294967295, %s1356_s17   ;;  %s989_s19 = sadd.s32 4294967294, %s1356_s17   ;;  %s1356_s17 = sphi %s1405_s17, %s22_s17   ;;  %s1352_s16 = sphi %s1403_s16, %s1825_s16   ;;  %s1348_s15 = sphi %s1401_s15, %s1824_s15   ;;  %s1344_s14 = sphi %s1399_s14, %s1823_s14   ;;  %s1340_s13 = sphi %s1397_s13, %s1822_s13   ;;  %s1336_s12 = sphi %s1395_s12, %s1821_s12  }
   0xb   : > { %p56_p0 = scmp.ne.s32.totalorder %s1340_s13, %s1336_s12  ;;  %p1797_p1 = scmp.eq.s32.totalorder %s1426_s18, 0 }
   0xc   : > { %p137_p3 = scmp.eq.s32.totalorder %s989_s19, 1  ;;  %p990_p5 = scmp.ge.s32.totalorder %s1356_s17, 1 }
   0xd   : > { %p1435_p4 = por %p1797_p1, %p56_p0  ;;  %p144_p7 = scmp.lt.s32.totalorder %s1356_s17, 3 }
   0xe   : > { %p1440_p6 = por %p137_p3, %p56_p0  ;;  %s1358_s23 = smov [#allocation8]  }
   0xf   : > { %s1803_s20 = scalar_select %p1435_p4, 1, 0 }
  0x10   : > { %s1804_s21 = scalar_select %p1440_p6, 1, 0 }
  0x11   : > { %p1445_p8 = pnand %p990_p5, %p144_p7  ;;  %s156_s24 = sshll.u32 %s1358_s23, 4  ;;  %s157_s24 = int_to_ptr.vmem [resolvable:$true] %s156_s24 }
  0x12   : > { %s34_s26 = sadd.s32 1, %s1352_s16  ;;  %s1807_s2 = sld [smem:[#allocation15_spill]] }
  0x13   : > { %s1805_s22 = scalar_select %p1445_p8, 1, 0 }
  0x14   : > { %p1088_p9 = pneg %p1445_p8 }
  0x16   : > { %p1454_p11 = pnand %p1088_p9, %p1797_p1 }
  0x18   : > { %s1178_s29 = scalar_lea.hbm %s1807_s2, 256  ;;  %p1180_p13 = pneg %p1454_p11 }
  0x19   : > { %p1179_p12 = scmp.ne.s32.totalorder %s1807_s2, %s1178_s29  ;;  %p1185_p5 = scmp.lt.u32.totalorder %s1178_s29, %s1807_s2 }
  0x1b   : > { %p1181_p0 = pnand %p1180_p13, %p1179_p12 }
  0x1d   : > { %p1182_p3 = pneg %p1181_p0 }
  0x1f   : > { %p1187_p7 = pnand %p1185_p5, %p1182_p3 }
  0x21   : > { %1190 = shalt.err (!%p1187_p7)
}
  0x22   : > { %s1191_s7 = scalar_lea.vmem %s157_s24, 256  ;;  %p1199_p2 = scmp.lt.s32.totalorder %s157_s24, %s157_s24 }
  0x23   : > { %p1192_p9 = scmp.ne.s32.totalorder %s157_s24, %s1191_s7  ;;  %p1200_p6 = scmp.lt.s32.totalorder %s1191_s7, %s1191_s7 }
  0x25   : > { %p1194_p10 = pnand %p1192_p9, %p1180_p13  ;;  %p1201_p4 = por %p1200_p6, %p1199_p2 }
  0x27   : > { %p1195_p1 = pneg %p1194_p10 }
  0x29   : > { %p1202_p8 = pnand %p1201_p4, %p1195_p1 }
  0x2b   : > { %1205 = shalt.err (!%p1202_p8)
}
  0x2c   : > { %s1359_s8 = smov 128   ;;  %s1360_s9 = smov 8  }
  0x2d   : > { %1091 = dma.hbm_to_vmem [thread:$0]  (!%p1454_p11), %s1807_s2, 256, %s157_s24, [#allocation7], %s1359_s8, %s1359_s8, %s1360_s9  }
  0x2e   : > { %p36_p1 = scmp.ge.s32.totalorder %s34_s26, 2  ;;  %s43_s19 = sadd.s32 1, %s1344_s14 }
  0x2f   : > { %p50_p2 = scmp.ne.s32.totalorder %s1344_s14, %s1340_s13  ;;  %p51_p4 = scmp.eq.s32.totalorder %s1356_s17, 0 }
  0x30   : > { %s1827_s26 = smov (%p36_p1, %s34_s26), 0  ;;  %p1810_p8 = scmp.eq.s32.totalorder %s1426_s18, 1 }
  0x31   : > { %1808 = sst [smem:[#allocation14_spill]] %s1827_s26  ;;  %p1481_p6 = por %p51_p4, %p50_p2 }
  0x32   : > { %p1487_p10 = por %p1810_p8, %p50_p2  ;;  %s38_s27 = ssub.s32 %s1352_s16, %s1827_s26 }
  0x33   : > { %p1104_p11 = scmp.lt.s32.totalorder %s1356_s17, 2  ;;  %p41_p12 = scmp.eq.s32.totalorder %s38_s27, 0 }
  0x34   : > { %s1811_s25 = scalar_select %p1487_p10, 1, 0 }
  0x35   : > { %s170_s24 = sand.u32 1, %s1344_s14   ;;  %s1010_s30 = sshll.u32 %s1352_s16, 8 }
  0x36   : > { %s1495_s28 = sshll.u32 %s170_s24, 4  ;;  %s1504_s6 = scalar_lea.hbm %s1793_s0, %s1010_s30 }
  0x37   : > { %s1498_s29 = scalar_select %p41_p12, %s1344_s14, %s43_s19  }
  0x38   : > { %s174_s7 = scalar_lea.vmem [#allocation3], %s1495_s28  ;;  %p1511_p13 = pnand %p1104_p11, %p1481_p6 }
  0x39   : > { %s184_s8 = sshll.u32 %s174_s7, 4  ;;  %s1518_s19 = scalar_lea.hbm %s1794_s1, %s1010_s30  ;;  %s1507_s8 = int_to_ptr.vmem [resolvable:$true] %s184_s8 }
  0x3a   : > { %s191_s27 = sand.u32 1, %s1356_s17   ;;  %s171_s4 = scalar_lea.sflag [#allocation4], %s170_s24 }
  0x3b   : > { %s1206_s5 = scalar_lea.hbm %s1504_s6, 256  ;;  %p1208_p3 = pneg %p1511_p13 }
  0x3c   : > { %p1207_p0 = scmp.ne.s32.totalorder %s1504_s6, %s1206_s5  ;;  %s1211_s2 = scalar_lea.hbm %s1793_s0, 512 }
  0x3d   : > { %p1212_p9 = scmp.lt.u32.totalorder %s1504_s6, %s1793_s0  ;;  %p1213_p1 = scmp.lt.u32.totalorder %s1211_s2, %s1206_s5 }
  0x3e   : > { %p1209_p5 = pnand %p1208_p3, %p1207_p0  ;;  %p1215_p4 = scmp.lt.u32.totalorder %s1206_s5, %s1504_s6 }
  0x3f   : > { %p1214_p2 = por %p1213_p1, %p1212_p9 }
  0x40   : > { %p1210_p7 = pneg %p1209_p5 }
  0x41   : > { %p1216_p6 = por %p1215_p4, %p1214_p2 }
  0x43   : > { %p1217_p8 = pnand %p1216_p6, %p1210_p7 }
  0x45   : > { %1220 = shalt.err (!%p1217_p8)
}
  0x46   : > { %s1221_s24 = scalar_lea.vmem %s1507_s8, 256  ;;  %s1361_s30 = smov [#allocation3]  }
  0x47   : > { %p1222_p11 = scmp.ne.s32.totalorder %s1507_s8, %s1221_s24  ;;  %s1226_s11 = sshll.u32 %s1361_s30, 4  ;;  %s1227_s11 = int_to_ptr.vmem [resolvable:$false] %s1226_s11 }
  0x48   : > { %s1228_s26 = scalar_lea.vmem %s1227_s11, 512  ;;  %p1229_p5 = scmp.lt.s32.totalorder %s1507_s8, %s1227_s11 }
  0x49   : > { %p1224_p12 = pnand %p1222_p11, %p1208_p3  ;;  %p1230_p9 = scmp.lt.s32.totalorder %s1228_s26, %s1221_s24 }
  0x4b   : > { %p1225_p0 = pneg %p1224_p12  ;;  %p1231_p1 = por %p1230_p9, %p1229_p5 }
  0x4d   : > { %p1232_p2 = pnand %p1231_p1, %p1225_p0 }
  0x4f   : > { %1235 = shalt.err (!%p1232_p2)
}
  0x50   : > { %1095 = dma.hbm_to_vmem [thread:$0]  (!%p1511_p13), %s1504_s6, 256, %s1507_s8, %s171_s4  }
  0x51   : > { %s195_s2 = scalar_lea.vmem [#allocation6], %s1495_s28  ;;  %s192_s23 = scalar_lea.sflag [#allocation7], %s191_s27 }
  0x52   : > { %s205_s5 = sshll.u32 %s195_s2, 4  ;;  %s1236_s7 = scalar_lea.hbm %s1518_s19, 256  ;;  %s206_s5 = int_to_ptr.vmem [resolvable:$true] %s205_s5 }
  0x53   : > { %p1237_p7 = scmp.ne.s32.totalorder %s1518_s19, %s1236_s7  ;;  %s1241_s30 = scalar_lea.hbm %s1794_s1, 512 }
  0x54   : > { %p1242_p8 = scmp.lt.u32.totalorder %s1518_s19, %s1794_s1  ;;  %p1243_p11 = scmp.lt.u32.totalorder %s1241_s30, %s1236_s7 }
  0x55   : > { %p1239_p4 = pnand %p1237_p7, %p1208_p3  ;;  %p1245_p0 = scmp.lt.u32.totalorder %s1236_s7, %s1518_s19 }
  0x56   : > { %p1244_p12 = por %p1243_p11, %p1242_p8 }
  0x57   : > { %p1240_p6 = pneg %p1239_p4 }
  0x58   : > { %p1246_p5 = por %p1245_p0, %p1244_p12 }
  0x5a   : > { %p1247_p9 = pnand %p1246_p5, %p1240_p6 }
  0x5c   : > { %1250 = shalt.err (!%p1247_p9)
}
  0x5d   : > { %s1251_s28 = scalar_lea.vmem %s206_s5, 256  ;;  %s1362_s6 = smov [#allocation6]  }
  0x5e   : > { %p1252_p1 = scmp.ne.s32.totalorder %s206_s5, %s1251_s28  ;;  %s1256_s8 = sshll.u32 %s1362_s6, 4  ;;  %s1257_s8 = int_to_ptr.vmem [resolvable:$false] %s1256_s8 }
  0x5f   : > { %s1258_s27 = scalar_lea.vmem %s1257_s8, 512  ;;  %p1259_p4 = scmp.lt.s32.totalorder %s206_s5, %s1257_s8 }
  0x60   : > { %p1254_p2 = pnand %p1252_p1, %p1208_p3  ;;  %p1260_p10 = scmp.lt.s32.totalorder %s1258_s27, %s1251_s28 }
  0x62   : > { %p1255_p7 = pneg %p1254_p2  ;;  %p1261_p8 = por %p1260_p10, %p1259_p4 }
  0x64   : > { %p1262_p11 = pnand %p1261_p8, %p1255_p7 }
  0x66   : > { %1265 = shalt.err (!%p1262_p11)
}
  0x67   : > { %1098 = dma.hbm_to_vmem [thread:$0]  (!%p1511_p13), %s1518_s19, 256, %s206_s5, %s192_s23  }
  0x68   : > { %p1813_p6 = scmp.ne.s32.totalorder %s1805_s22, 0 }
  0x69   : > { %s1571_s4 = sand.u32 (!%p1813_p6), 1, %s1340_s13   ;;  %p1814_p3 = scmp.ne.s32.totalorder (!%p1813_p6), %s1803_s20, 0 }
  0x6a   : > { %214 = sbr.rel (%p1813_p6) target bundleno = 599 (0x257), region = 32  ;;  %s1000_s2 = sshll.u32 (!%p1813_p6), %s1571_s4, 4 }
  0x6b   : > { %s217_s7 = scalar_lea.sflag (!%p1813_p6), [#allocation4], %s1571_s4  ;;  %s220_s10 = scalar_lea.vmem (!%p1813_p6), [#allocation3], %s1000_s2 }
  0x71   : > { %1319 = dma.done.wait (%p1814_p3), %s217_s7, 256  }
  0x72   : > { %1321 = vsyncadd (%p1814_p3), %s217_s7, 4294967040  ;;  %s225_s9 = sand.u32 1, %s1426_s18   ;;  %s1580_s22 = scalar_lea.vmem [#allocation6], %s1000_s2 }
  0x73   : > { %s226_s19 = scalar_lea.sflag [#allocation7], %s225_s9 }
  0x74   : > { %1323 = dma.done.wait (%p1814_p3), %s226_s19, 256  }
  0x75   : > { %1325 = vsyncadd (%p1814_p3), %s226_s19, 4294967040  ;;  %p1815_p10 = scmp.eq.s32.totalorder %s1426_s18, 0 }
  0x77   : > { %1327 = dma.done.wait (%p1815_p10), [#allocation7], 256   ;;  %p1816_p13 = pmov %p1815_p10 }
  0x78   : > { %v294_v0 = vld [vmem:[%s220_s10 + $0x8] sm:$0xff]  ;;  %v269_v1 = vld [vmem:[%s220_s10] sm:$0xff]  ;;  %s1363_s5 = smov 126   ;;  %s1364_s23 = smov 127   ;;  %vm307_vm0 = vcmask 1031168   ;;  %vm685_vm1 = vcmask 588800  }
  0x79   : > { %1329 = vsyncadd (%p1816_p13), [#allocation7], 4294967040  ;;  %303 = vrot.lane.b32.xlu1 %v294_v0, %s1363_s5  ;;  %277 = vrot.lane.b32.xlu0 %v269_v1, %s1364_s23  ;;  %v297_v2 = vcombine.high %v269_v1, %v269_v1  ;;  %v1593_v3 = vld [vmem:[%s1580_s22] sm:$0xff]  ;;  %266 = vst [vmem:[#allocation2] sm:$0xf] %v269_v1  ;;  %s1365_s18 = smov 104   ;;  %v322_v6 = vcombine.low %v294_v0, %v294_v0 }
  0x7a   : > { %470 = vst [vmem:[#allocation2 + $0x68] sm:$0xf0] %v1593_v3  ;;  %v1598_v4 = vcombine.low %v1593_v3, %v1593_v3  ;;  %v262_v5 = vld [vmem:[%s220_s10 + $0x8] sm:$0xf]  ;;  %v273_v7 = vcombine.low %v269_v1, %v269_v1  ;;  %v298_v8 = vcombine.high %v294_v0, %v294_v0  ;;  %s1366_s20 = smov 103   ;;  %s1367_s24 = smov 102   ;;  %v476_v9 = vcombine.high %v1593_v3, %v1593_v3 }
  0x7b   : > { %267 = vst [vmem:[#allocation2 + $0x8] sm:$0xf] %v297_v2  ;;  %268 = vst [vmem:[#allocation2 + $0x10] sm:$0xf] %v262_v5  ;;  %s1368_s30 = smov 80   ;;  %s1369_s11 = smov 79  }
  0x7c   : > { %469 = vst [vmem:[#allocation2 + $0x60] sm:$0xf0] %v1598_v4  ;;  %s1370_s26 = smov 78   ;;  %v473_v10 = vld [vmem:[%s1580_s22 + $0x8] sm:$0xff]  ;;  %v1673_v16 = vld [vmem:[#allocation8] sm:$0xff]  ;;  %v1371_v17 = vmov 0.0  }
  0x7d   : > { %301 = vrot.lane.b32.xlu1 %v297_v2, %s1363_s5  ;;  %325 = vrot.lane.b32.xlu0 %v269_v1, %s1365_s18  ;;  %v1177_v11 = vld [vmem:[%s1580_s22 + $0x8] ss:$0 sps:$4 sm:$0xff]   ;;  %v500_v12 = vcombine.low %v473_v10, %v473_v10  ;;  %v477_v13 = vcombine.high %v473_v10, %v473_v10  ;;  %vm331_vm2 = vcmask 850944   ;;  %vm283_vm3 = vcmask 1039360   ;;  %s1076_s28 = smul.u32 48, %s1571_s4  ;;  %p1817_p0 = scmp.ne.s32.totalorder %s1811_s25, 0 }
  0x7e   : > { %471 = vst [vmem:[#allocation2 + $0x70] sm:$0xf0] %v1177_v11  ;;  %756 = vmatprep.mubr.f32.mxu0 %v1371_v17  ;;  %1041 = vmatprep.mubr.msk.f32.mxu1 %vm685_vm1, %v1673_v16  ;;  %vm355_vm4 = vcmask 842752   ;;  %vm379_vm5 = vcmask 834560   ;;  %vm403_vm6 = vcmask 654336   ;;  %vm427_vm7 = vcmask 646144  }
  0x7f   : > { %vm451_vm8 = vcmask 637952   ;;  %s260_s6 = scalar_lea.vmem [#allocation9], %s1076_s28  ;;  %s1077_s27 = smul.u32 768, %s1348_s15 }
  0x80   : > { %s866_s8 = sshll.u32 %s260_s6, 4  ;;  %s851_s15 = scalar_lea.sflag [#allocation5], %s1571_s4  ;;  %s1739_s8 = int_to_ptr.vmem [resolvable:$true] %s866_s8 }
  0x81   : > { %327 = vrot.lane.b32.xlu1 %v322_v6, %s1365_s18  ;;  %279 = vrot.lane.b32.xlu0 %v322_v6, %s1364_s23  ;;  %s1744_s10 = scalar_lea.hbm %s1796_s3, %s1077_s27  ;;  %s1266_s9 = scalar_lea.vmem %s1739_s8, 768 }
  0x82   : > { %p1267_p12 = scmp.ne.s32.totalorder %s1739_s8, %s1266_s9  ;;  %s1372_s19 = smov [#allocation9]  }
  0x83   : > { %s1270_s22 = sshll.u32 %s1372_s19, 4  ;;  %s1271_s22 = int_to_ptr.vmem [resolvable:$false] %s1270_s22 }
  0x84   : > { %p1268_p5 = pnand %p1267_p12, %p1817_p0  ;;  %p1273_p1 = scmp.lt.s32.totalorder %s1739_s8, %s1271_s22 }
  0x85   : > { %299 = vrot.lane.b32.xlu1 %v269_v1, %s1363_s5  ;;  %275 = vrot.lane.b32.xlu0 %v273_v7, %s1364_s23 }
  0x86   : > { %p1269_p9 = pneg %p1268_p5 }
  0x89   : > { %281 = vrot.lane.b32.xlu1 %v294_v0, %s1364_s23  ;;  %323 = vrot.lane.b32.xlu0 %v273_v7, %s1365_s18 }
  0x8d   : > { %329 = vrot.lane.b32.xlu1 %v294_v0, %s1365_s18  ;;  %305 = vrot.lane.b32.xlu0 %v298_v8, %s1363_s5 }
  0x91   : > { %351 = vrot.lane.b32.xlu1 %v294_v0, %s1366_s20  ;;  %349 = vrot.lane.b32.xlu0 %v297_v2, %s1366_s20 }
  0x95   : > { %375 = vrot.lane.b32.xlu1 %v322_v6, %s1367_s24  ;;  %373 = vrot.lane.b32.xlu0 %v269_v1, %s1367_s24 }
  0x99   : > { %399 = vrot.lane.b32.xlu1 %v294_v0, %s1368_s30  ;;  %397 = vrot.lane.b32.xlu0 %v297_v2, %s1368_s30 }
  0x9d   : > { %423 = vrot.lane.b32.xlu1 %v322_v6, %s1369_s11  ;;  %421 = vrot.lane.b32.xlu0 %v269_v1, %s1369_s11 }
  0xa1   : > { %371 = vrot.lane.b32.xlu1 %v273_v7, %s1367_s24  ;;  %347 = vrot.lane.b32.xlu0 %v269_v1, %s1366_s20 }
  0xa5   : > { %419 = vrot.lane.b32.xlu1 %v273_v7, %s1369_s11  ;;  %395 = vrot.lane.b32.xlu0 %v269_v1, %s1368_s30 }
  0xa9   : > { %377 = vrot.lane.b32.xlu1 %v294_v0, %s1367_s24  ;;  %353 = vrot.lane.b32.xlu0 %v298_v8, %s1366_s20 }
  0xad   : > { %425 = vrot.lane.b32.xlu1 %v294_v0, %s1369_s11  ;;  %401 = vrot.lane.b32.xlu0 %v298_v8, %s1368_s30 }
  0xb1   : > { %447 = vrot.lane.b32.xlu1 %v294_v0, %s1370_s26  ;;  %445 = vrot.lane.b32.xlu0 %v297_v2, %s1370_s26 }
  0xb5   : > { %482 = vrot.lane.b32.xlu1 %v473_v10, %s1364_s23  ;;  %480 = vrot.lane.b32.xlu0 %v476_v9, %s1364_s23 }
  0xb9   : > { %505 = vrot.lane.b32.xlu1 %v500_v12, %s1363_s5  ;;  %503 = vrot.lane.b32.xlu0 %v1593_v3, %s1363_s5 }
  0xbd   : > { %478 = vrot.lane.b32.xlu1 %v1593_v3, %s1364_s23  ;;  %443 = vrot.lane.b32.xlu0 %v269_v1, %s1370_s26 }
  0xc1   : > { %449 = vrot.lane.b32.xlu1 %v298_v8, %s1370_s26  ;;  %501 = vrot.lane.b32.xlu0 %v1598_v4, %s1363_s5 }
  0xc5   : > { %507 = vrot.lane.b32.xlu1 %v473_v10, %s1363_s5  ;;  %484 = vrot.lane.b32.xlu0 %v477_v13, %s1364_s23  ;;  %s1272_s5 = scalar_lea.vmem %s1271_s22, 1536 }
  0xc6   : > { %p1274_p2 = scmp.lt.s32.totalorder %s1272_s5, %s1266_s9 }
  0xc8   : > { %p1275_p7 = por %p1274_p2, %p1273_p1 }
  0xc9   : > { %528 = vrot.lane.b32.xlu1 %v473_v10, %s1365_s18  ;;  %526 = vrot.lane.b32.xlu0 %v476_v9, %s1365_s18 }
  0xca   : > { %p1276_p4 = pnand %p1275_p7, %p1269_p9 }
  0xcd   : > { %551 = vrot.lane.b32.xlu1 %v500_v12, %s1366_s20  ;;  %549 = vrot.lane.b32.xlu0 %v1593_v3, %s1366_s20 }
  0xd1   : > { %574 = vrot.lane.b32.xlu1 %v473_v10, %s1367_s24  ;;  %572 = vrot.lane.b32.xlu0 %v476_v9, %s1367_s24 }
  0xd5   : > { %597 = vrot.lane.b32.xlu1 %v500_v12, %s1368_s30  ;;  %595 = vrot.lane.b32.xlu0 %v1593_v3, %s1368_s30 }
  0xd9   : > { %547 = vrot.lane.b32.xlu1 %v1598_v4, %s1366_s20  ;;  %524 = vrot.lane.b32.xlu0 %v1593_v3, %s1365_s18 }
  0xdd   : > { %593 = vrot.lane.b32.xlu1 %v1598_v4, %s1368_s30  ;;  %570 = vrot.lane.b32.xlu0 %v1593_v3, %s1367_s24 }
  0xe1   : > { %553 = vrot.lane.b32.xlu1 %v473_v10, %s1366_s20  ;;  %530 = vrot.lane.b32.xlu0 %v477_v13, %s1365_s18 }
  0xe5   : > { %599 = vrot.lane.b32.xlu1 %v473_v10, %s1368_s30  ;;  %576 = vrot.lane.b32.xlu0 %v477_v13, %s1367_s24 }
  0xe9   : > { %620 = vrot.lane.b32.xlu1 %v473_v10, %s1369_s11  ;;  %618 = vrot.lane.b32.xlu0 %v476_v9, %s1369_s11 }
  0xeb   : > { %v304_v14 = vpop.permute.xlu1 %303  ;;  %v278_v15 = vpop.permute.xlu0 %277 }
  0xed   : > { %643 = vrot.lane.b32.xlu1 %v500_v12, %s1370_s26  ;;  %641 = vrot.lane.b32.xlu0 %v1593_v3, %s1370_s26 }
  0xef   : > { %v302_v18 = vpop.permute.xlu1 %301  ;;  %v326_v19 = vpop.permute.xlu0 %325 }
  0xf0   : > { %v309_v20 = vsel %vm307_vm0, %v302_v18, %v304_v14 }
  0xf1   : > { %315 = vst [vmem:[#allocation2 + $0x20] sm:$0xf] %v309_v20  ;;  %639 = vrot.lane.b32.xlu1 %v1598_v4, %s1370_s26  ;;  %616 = vrot.lane.b32.xlu0 %v1593_v3, %s1369_s11 }
  0xf3   : > { %v328_v21 = vpop.permute.xlu1 %327  ;;  %v280_v22 = vpop.permute.xlu0 %279 }
  0xf4   : > { %v333_v23 = vsel %vm331_vm2, %v326_v19, %v328_v21  ;;  %v285_v24 = vsel %vm283_vm3, %v278_v15, %v280_v22 }
  0xf5   : > { %339 = vst [vmem:[#allocation2 + $0x20] sm:$0xf0] %v333_v23  ;;  %291 = vst [vmem:[#allocation2 + $0x8] sm:$0xf0] %v285_v24  ;;  %645 = vrot.lane.b32.xlu1 %v473_v10, %s1370_s26  ;;  %622 = vrot.lane.b32.xlu0 %v477_v13, %s1369_s11 }
  0xf7   : > { %v300_v25 = vpop.permute.xlu1 %299  ;;  %v276_v26 = vpop.permute.xlu0 %275 }
  0xf8   : > { %v308_v27 = vsel %vm307_vm0, %v300_v25, %v302_v18  ;;  %v284_v28 = vsel %vm283_vm3, %v276_v26, %v278_v15 }
  0xf9   : > { %314 = vst [vmem:[#allocation2 + $0x18] sm:$0xf] %v308_v27  ;;  %290 = vst [vmem:[#allocation2] sm:$0xf0] %v284_v28 }
  0xfb   : > { %v282_v29 = vpop.permute.xlu1 %281  ;;  %v324_v30 = vpop.permute.xlu0 %323 }
  0xfc   : > { %v286_v31 = vsel %vm283_vm3, %v280_v22, %v282_v29  ;;  %v332_v32 = vsel %vm331_vm2, %v324_v30, %v326_v19  ;;  %v659_v33 = vld [vmem:[#allocation2 + $0x8] sm:$0xff]  ;;  %v662_v34 = vld [vmem:[#allocation2 + $0x20] sm:$0xff] }
  0xfd   : > { %292 = vst [vmem:[#allocation2 + $0x10] sm:$0xf0] %v286_v31  ;;  %338 = vst [vmem:[#allocation2 + $0x18] sm:$0xf0] %v332_v32  ;;  %v1044_v35 = vpack.c.bf16 %v662_v34, %v659_v33 }
  0xff   : > { %v330_v36 = vpop.permute.xlu1 %329  ;;  %v306_v37 = vpop.permute.xlu0 %305  ;;  %1045 = vmatprep.subr.bf16.mxu0 %v1044_v35 }
 0x100   : > { %v334_v38 = vsel %vm331_vm2, %v328_v21, %v330_v36  ;;  %v310_v39 = vsel %vm307_vm0, %v304_v14, %v306_v37  ;;  %v658_v43 = vld [vmem:[#allocation2] sm:$0xff] }
 0x101   : > { %340 = vst [vmem:[#allocation2 + $0x28] sm:$0xf0] %v334_v38  ;;  %316 = vst [vmem:[#allocation2 + $0x28] sm:$0xf] %v310_v39 }
 0x103   : > { %v352_v40 = vpop.permute.xlu1 %351  ;;  %v350_v41 = vpop.permute.xlu0 %349 }
 0x104   : > { %v357_v42 = vsel %vm355_vm4, %v350_v41, %v352_v40  ;;  %v661_v44 = vld [vmem:[#allocation2 + $0x18] sm:$0xff]  ;;  %v660_v49 = vld [vmem:[#allocation2 + $0x10] sm:$0xff] }
 0x105   : > { %363 = vst [vmem:[#allocation2 + $0x38] sm:$0xf] %v357_v42  ;;  %v1046_v45 = vpack.c.bf16 %v661_v44, %v658_v43 }
 0x107   : > { %v376_v46 = vpop.permute.xlu1 %375  ;;  %v374_v47 = vpop.permute.xlu0 %373  ;;  %1047 = vmatpush1.bf16.msra.mxu0 %v1046_v45 }
 0x108   : > { %v381_v48 = vsel %vm379_vm5, %v374_v47, %v376_v46  ;;  %v663_v50 = vld [vmem:[#allocation2 + $0x28] sm:$0xff] }
 0x109   : > { %387 = vst [vmem:[#allocation2 + $0x38] sm:$0xf0] %v381_v48  ;;  %v1060_v51 = vpack.c.bf16 %v663_v50, %v660_v49 }
 0x10b   : > { %v400_v52 = vpop.permute.xlu1 %399  ;;  %v398_v53 = vpop.permute.xlu0 %397  ;;  %1061 = vmatprep.subr.bf16.mxu1 %v1060_v51 }
 0x10c   : > { %v405_v54 = vsel %vm403_vm6, %v398_v53, %v400_v52  ;;  %1063 = vmatpush3.bf16.msra.mxu1 %v1060_v51 }
 0x10d   : > { %411 = vst [vmem:[#allocation2 + $0x50] sm:$0xf] %v405_v54 }
 0x10f   : > { %v424_v55 = vpop.permute.xlu1 %423  ;;  %v422_v56 = vpop.permute.xlu0 %421 }
 0x110   : > { %v429_v57 = vsel %vm427_vm7, %v422_v56, %v424_v55  ;;  %v665_v2 = vld [vmem:[#allocation2 + $0x38] sm:$0xff] }
 0x111   : > { %435 = vst [vmem:[#allocation2 + $0x50] sm:$0xf0] %v429_v57 }
 0x113   : > { %v372_v58 = vpop.permute.xlu1 %371  ;;  %v348_v59 = vpop.permute.xlu0 %347 }
 0x114   : > { %v380_v60 = vsel %vm379_vm5, %v372_v58, %v374_v47  ;;  %v356_v61 = vsel %vm355_vm4, %v348_v59, %v350_v41 }
 0x115   : > { %386 = vst [vmem:[#allocation2 + $0x30] sm:$0xf0] %v380_v60  ;;  %362 = vst [vmem:[#allocation2 + $0x30] sm:$0xf] %v356_v61 }
 0x117   : > { %v420_v62 = vpop.permute.xlu1 %419  ;;  %v396_v63 = vpop.permute.xlu0 %395 }
 0x118   : > { %v428_v0 = vsel %vm427_vm7, %v420_v62, %v422_v56  ;;  %v404_v1 = vsel %vm403_vm6, %v396_v63, %v398_v53  ;;  %v668_v3 = vld [vmem:[#allocation2 + $0x50] sm:$0xff] }
 0x119   : > { %434 = vst [vmem:[#allocation2 + $0x48] sm:$0xf0] %v428_v0  ;;  %410 = vst [vmem:[#allocation2 + $0x48] sm:$0xf] %v404_v1  ;;  %v1048_v4 = vpack.c.bf16 %v668_v3, %v665_v2 }
 0x11b   : > { %v378_v5 = vpop.permute.xlu1 %377  ;;  %v354_v6 = vpop.permute.xlu0 %353  ;;  %1049 = vmatprep.subr.bf16.mxu0 %v1048_v4 }
 0x11c   : > { %v382_v7 = vsel %vm379_vm5, %v376_v46, %v378_v5  ;;  %v358_v8 = vsel %vm355_vm4, %v352_v40, %v354_v6  ;;  %v664_v13 = vld [vmem:[#allocation2 + $0x30] sm:$0xff] }
 0x11d   : > { %388 = vst [vmem:[#allocation2 + $0x40] sm:$0xf0] %v382_v7  ;;  %364 = vst [vmem:[#allocation2 + $0x40] sm:$0xf] %v358_v8 }
 0x11f   : > { %v426_v9 = vpop.permute.xlu1 %425  ;;  %v402_v10 = vpop.permute.xlu0 %401 }
 0x120   : > { %v430_v11 = vsel %vm427_vm7, %v424_v55, %v426_v9  ;;  %v406_v12 = vsel %vm403_vm6, %v400_v52, %v402_v10  ;;  %v667_v14 = vld [vmem:[#allocation2 + $0x48] sm:$0xff] }
 0x121   : > { %436 = vst [vmem:[#allocation2 + $0x58] sm:$0xf0] %v430_v11  ;;  %412 = vst [vmem:[#allocation2 + $0x58] sm:$0xf] %v406_v12  ;;  %v1050_v15 = vpack.c.bf16 %v667_v14, %v664_v13 }
 0x123   : > { %v448_v18 = vpop.permute.xlu1 %447  ;;  %v446_v19 = vpop.permute.xlu0 %445  ;;  %1051 = vmatpush1.bf16.msra.mxu0 %v1050_v15 }
 0x124   : > { %v453_v20 = vsel %vm451_vm8, %v446_v19, %v448_v18  ;;  %v666_v24 = vld [vmem:[#allocation2 + $0x40] sm:$0xff] }
 0x125   : > { %459 = vst [vmem:[#allocation2 + $0x68] sm:$0xf] %v453_v20 }
 0x127   : > { %v483_v21 = vpop.permute.xlu1 %482  ;;  %v481_v22 = vpop.permute.xlu0 %480 }
 0x128   : > { %v487_v23 = vsel %vm283_vm3, %v481_v22, %v483_v21  ;;  %v669_v25 = vld [vmem:[#allocation2 + $0x58] sm:$0xff] }
 0x129   : > { %493 = vst [vmem:[#allocation2 + $0x80] sm:$0xf] %v487_v23  ;;  %v1064_v26 = vpack.c.bf16 %v669_v25, %v666_v24 }
 0x12b   : > { %v506_v27 = vpop.permute.xlu1 %505  ;;  %v504_v28 = vpop.permute.xlu0 %503  ;;  %1065 = vmatprep.subr.bf16.mxu1 %v1064_v26 }
 0x12c   : > { %v510_v29 = vsel %vm307_vm0, %v504_v28, %v506_v27  ;;  %1067 = vmatpush3.bf16.msra.mxu1 %v1064_v26  ;;  %v671_v38 = vld [vmem:[#allocation2 + $0x68] sm:$0xff] }
 0x12d   : > { %516 = vst [vmem:[#allocation2 + $0x80] sm:$0xf0] %v510_v29 }
 0x12f   : > { %v479_v30 = vpop.permute.xlu1 %478  ;;  %v444_v31 = vpop.permute.xlu0 %443 }
 0x130   : > { %v486_v32 = vsel %vm283_vm3, %v479_v30, %v481_v22  ;;  %v452_v33 = vsel %vm451_vm8, %v444_v31, %v446_v19 }
 0x131   : > { %492 = vst [vmem:[#allocation2 + $0x78] sm:$0xf] %v486_v32  ;;  %458 = vst [vmem:[#allocation2 + $0x60] sm:$0xf] %v452_v33 }
 0x133   : > { %v450_v34 = vpop.permute.xlu1 %449  ;;  %v502_v35 = vpop.permute.xlu0 %501 }
 0x134   : > { %v454_v36 = vsel %vm451_vm8, %v448_v18, %v450_v34  ;;  %v509_v37 = vsel %vm307_vm0, %v502_v35, %v504_v28  ;;  %v674_v39 = vld [vmem:[#allocation2 + $0x80] sm:$0xff] }
 0x135   : > { %460 = vst [vmem:[#allocation2 + $0x70] sm:$0xf] %v454_v36  ;;  %515 = vst [vmem:[#allocation2 + $0x78] sm:$0xf0] %v509_v37  ;;  %v1052_v40 = vpack.c.bf16 %v674_v39, %v671_v38 }
 0x137   : > { %v508_v41 = vpop.permute.xlu1 %507  ;;  %v485_v42 = vpop.permute.xlu0 %484  ;;  %1053 = vmatprep.subr.bf16.mxu0 %v1052_v40 }
 0x138   : > { %v511_v43 = vsel %vm307_vm0, %v506_v27, %v508_v41  ;;  %v488_v44 = vsel %vm283_vm3, %v483_v21, %v485_v42  ;;  %v670_v48 = vld [vmem:[#allocation2 + $0x60] sm:$0xff] }
 0x139   : > { %517 = vst [vmem:[#allocation2 + $0x88] sm:$0xf0] %v511_v43  ;;  %494 = vst [vmem:[#allocation2 + $0x88] sm:$0xf] %v488_v44  ;;  %v657_v42 = vld [vmem:[#allocation8 + $0x8] sm:$0xff] }
 0x13b   : > { %v529_v45 = vpop.permute.xlu1 %528  ;;  %v527_v46 = vpop.permute.xlu0 %526 }
 0x13c   : > { %v533_v47 = vsel %vm331_vm2, %v527_v46, %v529_v45  ;;  %v673_v49 = vld [vmem:[#allocation2 + $0x78] sm:$0xff]  ;;  %v672_v54 = vld [vmem:[#allocation2 + $0x70] sm:$0xff] }
 0x13d   : > { %539 = vst [vmem:[#allocation2 + $0x98] sm:$0xf] %v533_v47  ;;  %v1054_v50 = vpack.c.bf16 %v673_v49, %v670_v48 }
 0x13f   : > { %v552_v51 = vpop.permute.xlu1 %551  ;;  %v550_v52 = vpop.permute.xlu0 %549  ;;  %1055 = vmatpush1.bf16.msra.mxu0 %v1054_v50 }
 0x140   : > { %v556_v53 = vsel %vm355_vm4, %v550_v52, %v552_v51  ;;  %v675_v55 = vld [vmem:[#allocation2 + $0x88] sm:$0xff] }
 0x141   : > { %562 = vst [vmem:[#allocation2 + $0x98] sm:$0xf0] %v556_v53  ;;  %v1068_v56 = vpack.c.bf16 %v675_v55, %v672_v54 }
 0x143   : > { %v575_v57 = vpop.permute.xlu1 %574  ;;  %v573_v58 = vpop.permute.xlu0 %572  ;;  %1069 = vmatprep.subr.bf16.mxu1 %v1068_v56 }
 0x144   : > { %v579_v59 = vsel %vm379_vm5, %v573_v58, %v575_v57  ;;  %1071 = vmatpush3.bf16.msra.mxu1 %v1068_v56 }
 0x145   : > { %585 = vst [vmem:[#allocation2 + $0xb0] sm:$0xf] %v579_v59 }
 0x147   : > { %v598_v60 = vpop.permute.xlu1 %597  ;;  %v596_v61 = vpop.permute.xlu0 %595 }
 0x148   : > { %v602_v62 = vsel %vm403_vm6, %v596_v61, %v598_v60  ;;  %v677_v7 = vld [vmem:[#allocation2 + $0x98] sm:$0xff] }
 0x149   : > { %608 = vst [vmem:[#allocation2 + $0xb0] sm:$0xf0] %v602_v62 }
 0x14b   : > { %v548_v63 = vpop.permute.xlu1 %547  ;;  %v525_v0 = vpop.permute.xlu0 %524 }
 0x14c   : > { %v555_v1 = vsel %vm355_vm4, %v548_v63, %v550_v52  ;;  %v532_v2 = vsel %vm331_vm2, %v525_v0, %v527_v46 }
 0x14d   : > { %561 = vst [vmem:[#allocation2 + $0x90] sm:$0xf0] %v555_v1  ;;  %538 = vst [vmem:[#allocation2 + $0x90] sm:$0xf] %v532_v2 }
 0x14f   : > { %v594_v3 = vpop.permute.xlu1 %593  ;;  %v571_v4 = vpop.permute.xlu0 %570 }
 0x150   : > { %v601_v5 = vsel %vm403_vm6, %v594_v3, %v596_v61  ;;  %v578_v6 = vsel %vm379_vm5, %v571_v4, %v573_v58  ;;  %v680_v8 = vld [vmem:[#allocation2 + $0xb0] sm:$0xff] }
 0x151   : > { %607 = vst [vmem:[#allocation2 + $0xa8] sm:$0xf0] %v601_v5  ;;  %584 = vst [vmem:[#allocation2 + $0xa8] sm:$0xf] %v578_v6  ;;  %v1056_v9 = vpack.c.bf16 %v680_v8, %v677_v7 }
 0x153   : > { %v554_v10 = vpop.permute.xlu1 %553  ;;  %v531_v11 = vpop.permute.xlu0 %530  ;;  %1057 = vmatprep.subr.bf16.mxu0 %v1056_v9 }
 0x154   : > { %v557_v12 = vsel %vm355_vm4, %v552_v51, %v554_v10  ;;  %v534_v13 = vsel %vm331_vm2, %v529_v45, %v531_v11  ;;  %v676_v20 = vld [vmem:[#allocation2 + $0x90] sm:$0xff] }
 0x155   : > { %563 = vst [vmem:[#allocation2 + $0xa0] sm:$0xf0] %v557_v12  ;;  %540 = vst [vmem:[#allocation2 + $0xa0] sm:$0xf] %v534_v13 }
 0x157   : > { %v600_v14 = vpop.permute.xlu1 %599  ;;  %v577_v15 = vpop.permute.xlu0 %576 }
 0x158   : > { %v603_v18 = vsel %vm403_vm6, %v598_v60, %v600_v14  ;;  %v580_v19 = vsel %vm379_vm5, %v575_v57, %v577_v15  ;;  %v679_v21 = vld [vmem:[#allocation2 + $0xa8] sm:$0xff] }
 0x159   : > { %609 = vst [vmem:[#allocation2 + $0xb8] sm:$0xf0] %v603_v18  ;;  %586 = vst [vmem:[#allocation2 + $0xb8] sm:$0xf] %v580_v19  ;;  %v1058_v22 = vpack.c.bf16 %v679_v21, %v676_v20 }
 0x15b   : > { %v621_v23 = vpop.permute.xlu1 %620  ;;  %v619_v24 = vpop.permute.xlu0 %618  ;;  %1059 = vmatpush1.bf16.msra.mxu0 %v1058_v22 }
 0x15c   : > { %v625_v25 = vsel %vm427_vm7, %v619_v24, %v621_v23  ;;  %v678_v29 = vld [vmem:[#allocation2 + $0xa0] sm:$0xff] }
 0x15d   : > { %631 = vst [vmem:[#allocation2 + $0xc8] sm:$0xf] %v625_v25 }
 0x15f   : > { %v644_v26 = vpop.permute.xlu1 %643  ;;  %v642_v27 = vpop.permute.xlu0 %641 }
 0x160   : > { %v648_v28 = vsel %vm451_vm8, %v642_v27, %v644_v26  ;;  %v681_v30 = vld [vmem:[#allocation2 + $0xb8] sm:$0xff] }
 0x161   : > { %654 = vst [vmem:[#allocation2 + $0xc8] sm:$0xf0] %v648_v28  ;;  %v1072_v31 = vpack.c.bf16 %v681_v30, %v678_v29 }
 0x163   : > { %v640_v32 = vpop.permute.xlu1 %639  ;;  %v617_v33 = vpop.permute.xlu0 %616  ;;  %1073 = vmatprep.subr.bf16.mxu1 %v1072_v31 }
 0x164   : > { %v647_v34 = vsel %vm451_vm8, %v640_v32, %v642_v27  ;;  %v624_v35 = vsel %vm427_vm7, %v617_v33, %v619_v24  ;;  %1075 = vmatpush3.bf16.msra.mxu1 %v1072_v31 }
 0x165   : > { %653 = vst [vmem:[#allocation2 + $0xc0] sm:$0xf0] %v647_v34  ;;  %630 = vst [vmem:[#allocation2 + $0xc0] sm:$0xf] %v624_v35 }
 0x167   : > { %v646_v36 = vpop.permute.xlu1 %645  ;;  %v623_v37 = vpop.permute.xlu0 %622 }
 0x168   : > { %v649_v38 = vsel %vm451_vm8, %v644_v26, %v646_v36  ;;  %v626_v39 = vsel %vm427_vm7, %v621_v23, %v623_v37  ;;  %v683_v40 = vld [vmem:[#allocation2 + $0xc8] sm:$0xff] }
 0x169   : > { %655 = vst [vmem:[#allocation2 + $0xd0] sm:$0xf0] %v649_v38  ;;  %632 = vst [vmem:[#allocation2 + $0xd0] sm:$0xf] %v626_v39  ;;  %708 = vmatprep.subr.mxu0 %v683_v40 }
 0x16c   : > { %v682_v41 = vld [vmem:[#allocation2 + $0xc0] sm:$0xff] }
 0x16d   : > { %709 = vmatpush1.msra.mxu0 %v682_v41 }
 0x16e   : > { %1003 = vmatmul.mubr.msk.f32.vlgmr.msra.gmra.mrb[0].mxu0 %vm685_vm1, %v1673_v16 }
 0x16f   : > { %762 = vmatprep.mubr.f32.mxu0 %v1371_v17 }
 0x170   : > { %v684_v43 = vld [vmem:[#allocation2 + $0xd0] sm:$0xff] }
 0x171   : > { %1039 = vmatprep.subr.mxu1 %v684_v43 }
 0x172   : > { %1004 = vmatmul.mubr.msk.f32.gmra.mrb[2].mxu0 %vm685_vm1, %v657_v42  ;;  %1040 = vmatpush3.msra.mxu1 %v684_v43 }
 0x173   : > { %1042 = vmatmul.mubr.msk.f32.vlgmr.msra.gmra.mrb[0].mxu1 %vm685_vm1, %v657_v42 }
 0x241   : > { %v758_v44 = vpop.f32.mrb[0].mxu0 }
 0x242   : > { %844 = vst [vmem:[%s260_s6] sm:$0xff] %v758_v44  ;;  %v760_v45 = vpop.f32.mrb[1].mxu0 }
 0x243   : > { %845 = vst [vmem:[%s260_s6 + $0x8] sm:$0xff] %v760_v45 }
 0x245   : > { %v764_v16 = vpop.f32.mrb[2].mxu0 }
 0x246   : > { %847 = vst [vmem:[%s260_s6 + $0x18] sm:$0xff] %v764_v16  ;;  %v766_v17 = vpop.f32.mrb[3].mxu0  ;;  %v1043_v46 = vpop.f32.mrb[0].mxu1 }
 0x247   : > { %848 = vst [vmem:[%s260_s6 + $0x20] sm:$0xff] %v766_v17  ;;  %849 = vst [vmem:[%s260_s6 + $0x28] sm:$0xff] %v1043_v46  ;;  %v835_v47 = vpop.f32.mrb[1].mxu1 }
 0x248   : > { %846 = vst [vmem:[%s260_s6 + $0x10] sm:$0xff] %v835_v47 }
 0x249   : > { %1279 = shalt.err (!%p1276_p4)
}
 0x24a   : > { %s1280_s23 = scalar_lea.hbm %s1744_s10, 768  ;;  %s1284_s24 = scalar_lea.hbm %s1796_s3, 1536 }
 0x24b   : > { %p1281_p8 = scmp.ne.s32.totalorder %s1744_s10, %s1280_s23  ;;  %p1285_p3 = scmp.lt.u32.totalorder %s1744_s10, %s1796_s3 }
 0x24c   : > { %p1286_p10 = scmp.lt.u32.totalorder %s1284_s24, %s1280_s23  ;;  %p1288_p12 = scmp.lt.u32.totalorder %s1280_s23, %s1744_s10 }
 0x24d   : > { %p1282_p11 = pnand %p1281_p8, %p1817_p0 }
 0x24e   : > { %p1287_p13 = por %p1286_p10, %p1285_p3 }
 0x24f   : > { %p1283_p6 = pneg %p1282_p11 }
 0x250   : > { %p1289_p5 = por %p1288_p12, %p1287_p13 }
 0x252   : > { %p1290_p9 = pnand %p1289_p5, %p1283_p6 }
 0x254   : > { %1293 = shalt.err (!%p1290_p9)
}
 0x255   : > { %s1373_s26 = smov 384   ;;  %s1374_s28 = smov 24  }
 0x256   : > { %1086 = dma.vmem_to_hbm [thread:$0]  (%p1817_p0), %s1739_s8, 768, %s1744_s10, %s851_s15, %s1373_s26, %s1373_s26, %s1374_s28  }
 0x257 PF: > { %s881_s6 = sand.u32 1, %s1336_s12   ;;  %p1818_p1 = scmp.ne.s32.totalorder %s1804_s21, 0 }
 0x258   : > { %p1819_p2 = scmp.ge.s32.totalorder %s1356_s17, 2  ;;  %s882_s27 = scalar_lea.sflag [#allocation5], %s881_s6 }
 0x25a   : > { %p1100_p7 = pnand %p1819_p2, %p1818_p1 }
 0x25c   : > { %1331 = dma.done.wait (!%p1100_p7), %s882_s27, 768  }
 0x25d   : > { %1333 = vsyncadd (!%p1100_p7), %s882_s27, 4294966528  ;;  %s22_s17 = sadd.s32 1, %s1356_s17   ;;  %s1820_s25 = sld [smem:[#allocation14_spill]] }
 0x25e   : > { %p19_p4 = scmp.ge.s32.totalorder %s22_s17, 4   ;;  %s1821_s12 = smov %s1340_s13 }
 0x25f   : > { %s1822_s13 = smov %s1344_s14  ;;  %s1823_s14 = smov %s1498_s29 }
 0x260   : > { %s1824_s15 = smov %s1352_s16  ;;  %21 = sbr.rel (!%p19_p4) target bundleno = 10 (0xa), region = 94 }
 0x263   : > { %s1825_s16 = smov %s1820_s25 }
 0x267   :  { %887 = vsyncpa [#allocation4], 1 }
 0x268   :  { %889 = vsyncpa [#allocation4 + $0x1], 1 }
 0x269   :  { %890 = vsyncpa [#allocation7], 1 }
 0x26a   :  { %892 = vsyncpa [#allocation7 + $0x1], 1 }
 0x26b   :  { %893 = vsyncpa [#allocation5], 1 }
 0x26c   :  { %895 = vsyncpa [#allocation5 + $0x1], 1 }

</bundles_post_ra>
